<compile_context>
chip_gen: v7x
topology: tpu7x:2x2x1
jax: 0.10.0
libtpu: 0.0.40
codegen_flags: <defaults>
</compile_context>

<pallas_src>
import jax
import jax.numpy as jnp
from jax.experimental import pallas as pl
from jax.experimental.pallas import tpu as pltpu

C = 64            # conv / hidden channels
L_IN = 3          # input length implied by Linear(5*64, ...): L_IN + 2 == 5
T1 = L_IN + 1     # length after conv1 (k=2, stride=1, pad=1)  -> 4
T2 = L_IN + 2     # length after conv2                          -> 5
N_OUT = 5
K = 2             # conv kernel size
LANE_IN = 8       # lane-padded input width: [xpad(5), ones(1), 0, 0]
LANE_OUT = 8      # lane-padded output width; wrapper slices [:, :N_OUT]
NEG_SLOPE = 0.01  # PyTorch LeakyReLU default
BN_EPS = 1e-5

_PARAM_ORDER = ["w1", "w2", "b2", "wl1", "bl1", "wl2", "bl2"]


# ------------------------------- kernel --------------------------------------

def _cnn_features_kernel(x_ref, w1_ref, w2_ref, b2_ref, wl1_ref, bl1_ref,
                         wl2_ref, bl2_ref, out_ref):
    mm = lambda a, b: jnp.dot(a, b, preferred_element_type=jnp.float32)
    cdt = w1_ref.dtype            # matmul-operand dtype (f32 or bf16); acc is f32

    x = x_ref[...].astype(cdt)                               # (TB, 8)

    # conv1(1->64, k=2, pad=1) + bias + ReLU as one tiny matmul; the bias rides
    # on the ones lane (row T2 of w1).  Result is lane-dense, time-major.
    h1 = jnp.maximum(mm(x, w1_ref[...]), 0.0)                # (TB, T1*C=256)
    # Dropout(0.3): identity at inference.
    # TODO(synk): training-mode Dropout RNG / batch-stat BatchNorm not modeled.

    # conv2(64->64, k=2, pad=1) + ReLU.  w2 is the block-banded (256,320) matrix
    # with BN1's post-ReLU affine folded into its rows / bias (wrapper-side).
    h2 = jnp.maximum(mm(h1.astype(cdt), w2_ref[...]) + b2_ref[...], 0.0)  # (TB, 320)

    # Linear(320,64) + LeakyReLU.  BN2 folded into wl1/bl1 (wrapper-side).
    z = mm(h2.astype(cdt), wl1_ref[...]) + bl1_ref[...]      # (TB, 64)
    z = jnp.where(z >= 0.0, z, NEG_SLOPE * z)
    # Dropout(0.5): identity at inference.

    # Linear(64,5), lane-padded to 8.  BN3 folded into wl2/bl2 (wrapper-side).
    out_ref[...] = mm(z.astype(cdt), wl2_ref[...]) + bl2_ref[...]


# ------------------------------- wrapper --------------------------------------

def _round_up(n, m):
    return ((n + m - 1) // m) * m


def _choose_tile(batch, max_tile_rows, min_grid):
    """Smallest tile count >= min_grid whose tile is <= max_tile_rows; TB mult of 8."""
    rows = _round_up(max(batch, 1), 8)
    n_tiles = max(min_grid, pl.cdiv(rows, max_tile_rows))
    tb = _round_up(pl.cdiv(rows, n_tiles), 8)
    return tb, tb * n_tiles


def cnn_features(x, kparams, *, max_tile_rows=2048, min_grid=2):
    """x: (B, L_IN) float32 -> (B, N_OUT) float32 (inference forward).

    max_tile_rows=2048 keeps live intermediates (~7 MiB f32) inside every
    generation's scoped-VMEM budget; min_grid=2 guarantees at least two grid
    steps so the "parallel" axis can shard across v7x's two TensorCores.
    """
    B = x.shape[0]
    TB, Bp = _choose_tile(B, max_tile_rows, min_grid)

    # conv padding=1 on the length axis, then lane-pad to 8 with a ones lane
    # (drives the conv1 bias row of w1).  Input stays f32; cast in-kernel.
    xpad = jnp.pad(x.astype(jnp.float32), ((0, 0), (1, 1)))          # (B, T2)
    x8 = jnp.zeros((Bp, LANE_IN), jnp.float32)
    x8 = x8.at[:B, :T2].set(xpad)
    x8 = x8.at[:, T2].set(1.0)

    params = tuple(kparams[k] for k in _PARAM_ORDER)
    in_specs = [pl.BlockSpec((TB, LANE_IN), lambda i: (i, 0))]       # batch-tiled input
    in_specs += [pl.BlockSpec(p.shape, lambda i: (0, 0)) for p in params]  # resident weights

    out = pl.pallas_call(
        _cnn_features_kernel,
        out_shape=jax.ShapeDtypeStruct((Bp, LANE_OUT), jnp.float32),
        grid=(Bp // TB,),
        in_specs=in_specs,
        out_specs=pl.BlockSpec((TB, LANE_OUT), lambda i: (i, 0)),
        compiler_params=pltpu.CompilerParams(
            dimension_semantics=("parallel",),          # megacore-shardable
            vmem_limit_bytes=32 * 1024 * 1024),         # covers TB up to ~4096 (v5e default is 16 MiB)
    )(x8, *params)
    return out[:B, :N_OUT]


# ----------------------- deterministic parameter setup -----------------------

def init_torch_params(key):
    """Synthetic params with PyTorch shapes (no checkpoint load)."""
    ks = jax.random.split(key, 20)
    n = lambda k, shape, s=0.2: (s * jax.random.normal(k, shape)).astype(jnp.float32)
    pos = lambda k, shape: (0.5 + jnp.abs(jax.random.normal(k, shape))).astype(jnp.float32)
    return {
        "conv1_w": n(ks[0], (C, 1, K)), "conv1_b": n(ks[1], (C,)),
        "bn1_g": 1.0 + n(ks[2], (C,)), "bn1_b": n(ks[3], (C,)),
        "bn1_m": n(ks[4], (C,)), "bn1_v": pos(ks[5], (C,)),
        "conv2_w": n(ks[6], (C, C, K)), "conv2_b": n(ks[7], (C,)),
        "bn2_g": 1.0 + n(ks[8], (C,)), "bn2_b": n(ks[9], (C,)),
        "bn2_m": n(ks[10], (C,)), "bn2_v": pos(ks[11], (C,)),
        "fc1_w": n(ks[12], (C, T2 * C)), "fc1_b": n(ks[13], (C,)),
        "bn3_g": 1.0 + n(ks[14], (C,)), "bn3_b": n(ks[15], (C,)),
        "bn3_m": n(ks[16], (C,)), "bn3_v": pos(ks[17], (C,)),
        "fc2_w": n(ks[18], (N_OUT, C)), "fc2_b": n(ks[19], (N_OUT,)),
    }


def _fold_bn(g, b, m, v):
    scale = g / jnp.sqrt(v + BN_EPS)
    return scale.reshape(1, -1), (b - m * scale).reshape(1, -1)


def torch_to_kernel_params(tp, compute_dtype=jnp.float32):
    """Convert PyTorch-layout params to the fused-kernel layout.

    compute_dtype sets the matmul-OPERAND dtype (f32 or bf16); biases and
    accumulation stay f32.
    """
    f32 = jnp.float32
    bn1s, bn1b = _fold_bn(tp["bn1_g"], tp["bn1_b"], tp["bn1_m"], tp["bn1_v"])
    bn2s, bn2b = _fold_bn(tp["bn2_g"], tp["bn2_b"], tp["bn2_m"], tp["bn2_v"])
    bn3s, bn3b = _fold_bn(tp["bn3_g"], tp["bn3_b"], tp["bn3_m"], tp["bn3_v"])

    # conv1 as an (8, T1*C) matmul weight.  Row r = input lane r (conv-padded
    # sample), row T2 = the ones lane that carries the bias.
    w1a = tp["conv1_w"][:, 0, 0]
    w1b = tp["conv1_w"][:, 0, 1]
    w1 = jnp.zeros((LANE_IN, T1 * C), f32)
    for t in range(T1):
        w1 = w1.at[t, t * C:(t + 1) * C].set(w1a)
        w1 = w1.at[t + 1, t * C:(t + 1) * C].set(w1b)
        w1 = w1.at[T2, t * C:(t + 1) * C].set(tp["conv1_b"])

    # conv2 (k=2, pad=1) as one block-banded (T1*C, T2*C) matrix (time-major);
    # zero blocks encode the conv padding.
    w2k0 = tp["conv2_w"][:, :, 0].T                 # (C_in, C_out)
    w2k1 = tp["conv2_w"][:, :, 1].T
    w2 = jnp.zeros((T1 * C, T2 * C), f32)
    for t in range(T2):
        if t >= 1:
            w2 = w2.at[(t - 1) * C:t * C, t * C:(t + 1) * C].set(w2k0)
        if t < T1:
            w2 = w2.at[t * C:(t + 1) * C, t * C:(t + 1) * C].set(w2k1)
    b2 = jnp.tile(tp["conv2_b"].reshape(1, C), (1, T2))             # (1, 320)
    # Fold post-ReLU BN1 affine into conv2 (bias fold uses the UNSCALED w2).
    bn1s_t = jnp.tile(bn1s, (1, T1))
    bn1b_t = jnp.tile(bn1b, (1, T1))
    b2 = bn1b_t @ w2 + b2
    w2 = bn1s_t.reshape(-1, 1) * w2

    # FC1: PyTorch flattens (B, C, T2) channel-major (i = c*T2 + t); the kernel
    # slab is time-major (j = t*C + c) -> permute rows, then fold BN2.
    wl1 = tp["fc1_w"].T.reshape(C, T2, C).transpose(1, 0, 2).reshape(T2 * C, C)
    bn2s_t = jnp.tile(bn2s, (1, T2))
    bn2b_t = jnp.tile(bn2b, (1, T2))
    bl1 = bn2b_t @ wl1 + tp["fc1_b"].reshape(1, C)
    wl1 = bn2s_t.reshape(-1, 1) * wl1

    # FC2: lane-pad to 8 columns, fold BN3.
    wl2 = jnp.zeros((C, LANE_OUT), f32).at[:, :N_OUT].set(tp["fc2_w"].T)
    bl2 = jnp.zeros((1, LANE_OUT), f32).at[:, :N_OUT].set(tp["fc2_b"].reshape(1, N_OUT))
    bl2 = bn3b @ wl2 + bl2
    wl2 = bn3s.reshape(-1, 1) * wl2

    cdt = compute_dtype
    return {
        "w1": w1.astype(cdt), "w2": w2.astype(cdt), "b2": b2.astype(f32),
        "wl1": wl1.astype(cdt), "bl1": bl1.astype(f32),
        "wl2": wl2.astype(cdt), "bl2": bl2.astype(f32),
    }


# ----------------------- pure-JAX reference (torch layout) -------------------

def _conv1d_ref(x_ncw, w, b):                  # w: (Co, Ci, 2), stride=1, pad=1
    xp = jnp.pad(x_ncw, ((0, 0), (0, 0), (1, 1)))
    lo = x_ncw.shape[-1] + 1
    return (jnp.einsum("bcl,oc->bol", xp[:, :, 0:lo], w[:, :, 0])
            + jnp.einsum("bcl,oc->bol", xp[:, :, 1:lo + 1], w[:, :, 1])
            + b[None, :, None])


def _bn_ref(x, g, b, m, v, axis):
    shp = [1] * x.ndim
    shp[axis] = -1
    rs = lambda a: a.reshape(shp)
    return (x - rs(m)) / jnp.sqrt(rs(v) + BN_EPS) * rs(g) + rs(b)


def torch_reference(x, tp):
    h = x[:, None, :]                                   # unsqueeze(1) -> (B, 1, L)
    h = _conv1d_ref(h, tp["conv1_w"], tp["conv1_b"])
    h = jnp.maximum(h, 0.0)
    h = _bn_ref(h, tp["bn1_g"], tp["bn1_b"], tp["bn1_m"], tp["bn1_v"], axis=1)
    h = _conv1d_ref(h, tp["conv2_w"], tp["conv2_b"])
    h = jnp.maximum(h, 0.0)
    h = _bn_ref(h, tp["bn2_g"], tp["bn2_b"], tp["bn2_m"], tp["bn2_v"], axis=1)
    flat = h.reshape(h.shape[0], -1)                    # (B, 64*5), channel-major
    z = flat @ tp["fc1_w"].T + tp["fc1_b"]
    z = jnp.where(z >= 0.0, z, NEG_SLOPE * z)
    z = _bn_ref(z, tp["bn3_g"], tp["bn3_b"], tp["bn3_m"], tp["bn3_v"], axis=1)
    return z @ tp["fc2_w"].T + tp["fc2_b"]


if __name__ == "__main__":
    root = jax.random.PRNGKey(0)
    kx, kp = jax.random.split(root)
    B = 8
    x = jax.random.normal(kx, (B, L_IN), dtype=jnp.float32)

    tp = init_torch_params(kp)
    ref = torch_reference(x, tp)

    # f32 matmul-operand path: must meet the 1e-3 reference gate.
    out = jax.block_until_ready(cnn_features(x, torch_to_kernel_params(tp)))
    assert out.shape == (B, N_OUT) and out.dtype == jnp.float32
    err = float(jnp.max(jnp.abs(out - ref)))
    if err > 1e-3:
        raise RuntimeError(f"f32 kernel/reference mismatch: max abs err = {err}")

    # bf16 matmul-operand path (MXU-native, f32 accumulation): looser gate, as
    # flagged in the review the 1e-3 bound does not generally hold for bf16.
    out_bf = jax.block_until_ready(
        cnn_features(x, torch_to_kernel_params(tp, compute_dtype=jnp.bfloat16)))
    err_bf = float(jnp.max(jnp.abs(out_bf - ref)))
    if not (err_bf < 2e-1):
        raise RuntimeError(f"bf16 kernel/reference mismatch: max abs err = {err_bf}")

    print("KERNEL_OK")
</pallas_src>

<mosaic_0001>
module attributes {stable_mosaic.version = 11 : i64} {
  func.func @_cnn_features_kernel(%arg0: i32, %arg1: memref<8x8xf32, #tpu.memory_space<vmem>>, %arg2: memref<8x256xf32, #tpu.memory_space<vmem>>, %arg3: memref<256x320xf32, #tpu.memory_space<vmem>>, %arg4: memref<1x320xf32, #tpu.memory_space<vmem>>, %arg5: memref<320x64xf32, #tpu.memory_space<vmem>>, %arg6: memref<1x64xf32, #tpu.memory_space<vmem>>, %arg7: memref<64x8xf32, #tpu.memory_space<vmem>>, %arg8: memref<1x8xf32, #tpu.memory_space<vmem>>, %arg9: memref<8x8xf32, #tpu.memory_space<vmem>>) attributes {dimension_semantics = [#tpu.dimension_semantics<parallel>], iteration_bounds = array<i64: 2>, scalar_prefetch = 0 : i64, scratch_operands = 0 : i64, tpu.core_type = #tpu.core_type<tc>, window_params = [{transform_indices = @transform_0, window_bounds = array<i64: 8, 8>}, {pipeline_mode = #tpu.pipeline_mode<synchronous>, transform_indices = @transform_1, window_bounds = array<i64: 8, 256>}, {pipeline_mode = #tpu.pipeline_mode<synchronous>, transform_indices = @transform_2, window_bounds = array<i64: 256, 320>}, {pipeline_mode = #tpu.pipeline_mode<synchronous>, transform_indices = @transform_3, window_bounds = array<i64: 1, 320>}, {pipeline_mode = #tpu.pipeline_mode<synchronous>, transform_indices = @transform_4, window_bounds = array<i64: 320, 64>}, {pipeline_mode = #tpu.pipeline_mode<synchronous>, transform_indices = @transform_5, window_bounds = array<i64: 1, 64>}, {pipeline_mode = #tpu.pipeline_mode<synchronous>, transform_indices = @transform_6, window_bounds = array<i64: 64, 8>}, {pipeline_mode = #tpu.pipeline_mode<synchronous>, transform_indices = @transform_7, window_bounds = array<i64: 1, 8>}, {transform_indices = @transform_8, window_bounds = array<i64: 8, 8>}]} {
    %c0 = arith.constant 0 : index
    %c0_0 = arith.constant 0 : index
    %0 = vector.load %arg1[%c0, %c0_0] : memref<8x8xf32, #tpu.memory_space<vmem>>, vector<8x8xf32>
    %c0_1 = arith.constant 0 : index
    %c0_2 = arith.constant 0 : index
    %1 = vector.load %arg2[%c0_1, %c0_2] : memref<8x256xf32, #tpu.memory_space<vmem>>, vector<8x256xf32>
    %cst = arith.constant dense<0.000000e+00> : vector<8x256xf32>
    %2 = tpu.matmul %0, %1, %cst {dimension_numbers = #tpu.dot_dimension_numbers<[1], [0], [0], [1], [0, 0, 1, 1], [], []>} : vector<8x8xf32>, vector<8x256xf32>, vector<8x256xf32> -> vector<8x256xf32>
    %cst_3 = arith.constant 0.000000e+00 : f32
    %3 = vector.broadcast %cst_3 : f32 to vector<8x256xf32>
    %4 = arith.maximumf %2, %3 : vector<8x256xf32>
    %c0_4 = arith.constant 0 : index
    %c0_5 = arith.constant 0 : index
    %5 = vector.load %arg3[%c0_4, %c0_5] : memref<256x320xf32, #tpu.memory_space<vmem>>, vector<256x320xf32>
    %cst_6 = arith.constant dense<0.000000e+00> : vector<8x320xf32>
    %6 = tpu.matmul %4, %5, %cst_6 {dimension_numbers = #tpu.dot_dimension_numbers<[1], [0], [0], [1], [0, 0, 1, 1], [], []>} : vector<8x256xf32>, vector<256x320xf32>, vector<8x320xf32> -> vector<8x320xf32>
    %c0_7 = arith.constant 0 : index
    %c0_8 = arith.constant 0 : index
    %7 = vector.load %arg4[%c0_7, %c0_8] : memref<1x320xf32, #tpu.memory_space<vmem>>, vector<1x320xf32>
    %8 = vector.broadcast %7 : vector<1x320xf32> to vector<8x320xf32>
    %9 = arith.addf %6, %8 : vector<8x320xf32>
    %cst_9 = arith.constant 0.000000e+00 : f32
    %10 = vector.broadcast %cst_9 : f32 to vector<8x320xf32>
    %11 = arith.maximumf %9, %10 : vector<8x320xf32>
    %c0_10 = arith.constant 0 : index
    %c0_11 = arith.constant 0 : index
    %12 = vector.load %arg5[%c0_10, %c0_11] : memref<320x64xf32, #tpu.memory_space<vmem>>, vector<320x64xf32>
    %cst_12 = arith.constant dense<0.000000e+00> : vector<8x64xf32>
    %13 = tpu.matmul %11, %12, %cst_12 {dimension_numbers = #tpu.dot_dimension_numbers<[1], [0], [0], [1], [0, 0, 1, 1], [], []>} : vector<8x320xf32>, vector<320x64xf32>, vector<8x64xf32> -> vector<8x64xf32>
    %c0_13 = arith.constant 0 : index
    %c0_14 = arith.constant 0 : index
    %14 = vector.load %arg6[%c0_13, %c0_14] : memref<1x64xf32, #tpu.memory_space<vmem>>, vector<1x64xf32>
    %15 = vector.broadcast %14 : vector<1x64xf32> to vector<8x64xf32>
    %16 = arith.addf %13, %15 : vector<8x64xf32>
    %cst_15 = arith.constant 0.000000e+00 : f32
    %17 = vector.broadcast %cst_15 : f32 to vector<8x64xf32>
    %18 = arith.cmpf oge, %16, %17 : vector<8x64xf32>
    %cst_16 = arith.constant 0.00999999977 : f32
    %19 = vector.broadcast %cst_16 : f32 to vector<8x64xf32>
    %20 = arith.mulf %19, %16 : vector<8x64xf32>
    %21 = arith.select %18, %16, %20 : vector<8x64xi1>, vector<8x64xf32>
    %c0_17 = arith.constant 0 : index
    %c0_18 = arith.constant 0 : index
    %22 = vector.load %arg7[%c0_17, %c0_18] : memref<64x8xf32, #tpu.memory_space<vmem>>, vector<64x8xf32>
    %cst_19 = arith.constant dense<0.000000e+00> : vector<8x8xf32>
    %23 = tpu.matmul %21, %22, %cst_19 {dimension_numbers = #tpu.dot_dimension_numbers<[1], [0], [0], [1], [0, 0, 1, 1], [], []>} : vector<8x64xf32>, vector<64x8xf32>, vector<8x8xf32> -> vector<8x8xf32>
    %c0_20 = arith.constant 0 : index
    %c0_21 = arith.constant 0 : index
    %24 = vector.load %arg8[%c0_20, %c0_21] : memref<1x8xf32, #tpu.memory_space<vmem>>, vector<1x8xf32>
    %25 = vector.broadcast %24 : vector<1x8xf32> to vector<8x8xf32>
    %26 = arith.addf %23, %25 : vector<8x8xf32>
    %c0_22 = arith.constant 0 : index
    %c0_23 = arith.constant 0 : index
    %27 = vector.load %arg9[%c0_22, %c0_23] : memref<8x8xf32, #tpu.memory_space<vmem>>, vector<8x8xf32>
    tpu.vector_store %arg9[%c0_22, %c0_23], %26 {strides = array<i32>} : memref<8x8xf32, #tpu.memory_space<vmem>>, vector<8x8xf32>,
    return
  }
  func.func @transform_0(%arg0: i32) -> (i32, i32) {
    %c0_i32 = arith.constant 0 : i32
    %c0_i32_0 = arith.constant 0 : i32
    return %arg0, %c0_i32 : i32, i32
  }
  func.func @transform_1(%arg0: i32) -> (i32, i32) {
    %c0_i32 = arith.constant 0 : i32
    %c0_i32_0 = arith.constant 0 : i32
    %c0_i32_1 = arith.constant 0 : i32
    return %c0_i32, %c0_i32_0 : i32, i32
  }
  func.func @transform_2(%arg0: i32) -> (i32, i32) {
    %c0_i32 = arith.constant 0 : i32
    %c0_i32_0 = arith.constant 0 : i32
    %c0_i32_1 = arith.constant 0 : i32
    return %c0_i32, %c0_i32_0 : i32, i32
  }
  func.func @transform_3(%arg0: i32) -> (i32, i32) {
    %c0_i32 = arith.constant 0 : i32
    %c0_i32_0 = arith.constant 0 : i32
    %c0_i32_1 = arith.constant 0 : i32
    return %c0_i32, %c0_i32_0 : i32, i32
  }
  func.func @transform_4(%arg0: i32) -> (i32, i32) {
    %c0_i32 = arith.constant 0 : i32
    %c0_i32_0 = arith.constant 0 : i32
    %c0_i32_1 = arith.constant 0 : i32
    return %c0_i32, %c0_i32_0 : i32, i32
  }
  func.func @transform_5(%arg0: i32) -> (i32, i32) {
    %c0_i32 = arith.constant 0 : i32
    %c0_i32_0 = arith.constant 0 : i32
    %c0_i32_1 = arith.constant 0 : i32
    return %c0_i32, %c0_i32_0 : i32, i32
  }
  func.func @transform_6(%arg0: i32) -> (i32, i32) {
    %c0_i32 = arith.constant 0 : i32
    %c0_i32_0 = arith.constant 0 : i32
    %c0_i32_1 = arith.constant 0 : i32
    return %c0_i32, %c0_i32_0 : i32, i32
  }
  func.func @transform_7(%arg0: i32) -> (i32, i32) {
    %c0_i32 = arith.constant 0 : i32
    %c0_i32_0 = arith.constant 0 : i32
    %c0_i32_1 = arith.constant 0 : i32
    return %c0_i32, %c0_i32_0 : i32, i32
  }
  func.func @transform_8(%arg0: i32) -> (i32, i32) {
    %c0_i32 = arith.constant 0 : i32
    %c0_i32_0 = arith.constant 0 : i32
    return %arg0, %c0_i32 : i32, i32
  }
}

</mosaic_0001>

<bundles_post_ra>
// kernel: tpu_custom_call.1
= control target key start
LH: loop header
LB: loop body
LE: loop exit
PB: predicated region body
PF: predicated region fallthrough
CT: control target
= control target key end

     0   :  { %s1333_s27 = smov 0   ;;  %s1821_s0 = inlined_call_operand.vmem [shape: f32[16,8], index: 0, kind: input, shape index: {}]   ;;  %s1822_s1 = inlined_call_operand.vmem [shape: f32[8,256], index: 1, kind: input, shape index: {}]   ;;  %s1823_s2 = inlined_call_operand.vmem [shape: f32[256,320], index: 2, kind: input, shape index: {}]   ;;  %s1824_s3 = inlined_call_operand.vmem [shape: f32[1,320], index: 3, kind: input, shape index: {}]   ;;  %s1825_s4 = inlined_call_operand.vmem [shape: f32[320,64], index: 4, kind: input, shape index: {}]   ;;  %s1826_s5 = inlined_call_operand.vmem [shape: f32[1,64], index: 5, kind: input, shape index: {}]   ;;  %s1827_s6 = inlined_call_operand.vmem [shape: f32[64,8], index: 6, kind: input, shape index: {}]   ;;  %s1828_s7 = inlined_call_operand.vmem [shape: f32[1,8], index: 7, kind: input, shape index: {}]   ;;  %s1829_s8 = inlined_call_operand.vmem [shape: f32[16,8], index: 8, kind: output, shape index: {}]  }
   0x1 LB: > { %s974_s28 = sadd.s32 4294967295, %s1283_s27   ;;  %p978_p0 = scmp.ge.s32.totalorder %s1283_s27, 1  ;;  %s1283_s27 = sphi %s1333_s27, %s18_s27  }
   0x2   : > { %p261_p1 = scmp.lt.s32.totalorder %s1283_s27, 3 }
   0x4   : > { %p262_p2 = pnand %p978_p0, %p261_p1 }
   0x5   : > { %v303_v0 = vld [vmem:[%s1822_s1 + $0x8] sm:$0xff] (!%p262_p2)  ;;  %v302_v1 = vld [vmem:[%s1822_s1] sm:$0xff] (!%p262_p2)  ;;  %p293_p3 = scmp.lt.s32.totalorder (!%p262_p2), %s974_s28, 1  ;;  %v1285_v3 = vmov (!%p262_p2), 0.0   ;;  %v384_v6 = vld [vmem:[%s1823_s2 + $0x18] sm:$0xff] (!%p262_p2)  ;;  %vm304_vm0 = vcmask (!%p262_p2), 64512  }
   0x6   : > { %265 = sbr.rel (%p262_p2) target bundleno = 888 (0x378), region = 52  ;;  %v382_v2 = vld [vmem:[%s1823_s2 + $0x8] sm:$0xff] (!%p262_p2)  ;;  %308 = vmatprep.subr.mxu0 (!%p262_p2), %v303_v0  ;;  %372 = vmatprep.mubr.f32.mxu0 (!%p262_p2), %v1285_v3  ;;  %v385_v4 = vld [vmem:[%s1823_s2 + $0x20] sm:$0xff] (!%p262_p2)  ;;  %v388_v9 = vld [vmem:[%s1823_s2 + $0x38] sm:$0xff] (!%p262_p2)  ;;  %vm1287_vm1 = vmmov (!%p262_p2), 0   ;;  %vm685_vm2 = vcmask (!%p262_p2), 523264  }
   0x7   : > { %v381_v5 = vld [vmem:[%s1823_s2] sm:$0xff] (!%p262_p2)  ;;  %309 = vmatpush1.msra.mxu0 (!%p262_p2), %v302_v1  ;;  %v1114_v7 = vpack.c.bf16 (!%p262_p2), %v385_v4, %v382_v2  ;;  %v391_v10 = vld [vmem:[%s1823_s2 + $0x50] sm:$0xff] (!%p262_p2)  ;;  %v390_v13 = vld [vmem:[%s1823_s2 + $0x48] sm:$0xff] (!%p262_p2) }
   0x8   : > { %v1116_v8 = vpack.c.bf16 (!%p262_p2), %v384_v6, %v381_v5  ;;  %v387_v11 = vld [vmem:[%s1823_s2 + $0x30] sm:$0xff] (!%p262_p2)  ;;  %v1118_v12 = vpack.c.bf16 (!%p262_p2), %v391_v10, %v388_v9  ;;  %v394_v14 = vld [vmem:[%s1823_s2 + $0x68] sm:$0xff] (!%p262_p2)  ;;  %v397_v15 = vld [vmem:[%s1823_s2 + $0x80] sm:$0xff] (!%p262_p2) }
   0x9   : > { %1115 = vmatprep.subr.bf16.mxu1 (!%p262_p2), %v1114_v7  ;;  %v1120_v16 = vpack.c.bf16 (!%p262_p2), %v390_v13, %v387_v11  ;;  %v1122_v18 = vpack.c.bf16 (!%p262_p2), %v397_v15, %v394_v14  ;;  %v393_v19 = vld [vmem:[%s1823_s2 + $0x60] sm:$0xff] (!%p262_p2)  ;;  %v396_v20 = vld [vmem:[%s1823_s2 + $0x78] sm:$0xff] (!%p262_p2)  ;;  %v403_v22 = vld [vmem:[%s1823_s2 + $0xb0] sm:$0xff] (!%p262_p2) }
   0xa   : > { %1117 = vmatpush1.bf16.msra.mxu1 (!%p262_p2), %v1116_v8  ;;  %v400_v21 = vld [vmem:[%s1823_s2 + $0x98] sm:$0xff] (!%p262_p2)  ;;  %v1124_v23 = vpack.c.bf16 (!%p262_p2), %v396_v20, %v393_v19  ;;  %v399_v25 = vld [vmem:[%s1823_s2 + $0x90] sm:$0xff] (!%p262_p2)  ;;  %v402_v26 = vld [vmem:[%s1823_s2 + $0xa8] sm:$0xff] (!%p262_p2) }
   0xb   : > { %1119 = vmatprep.subr.bf16.mxu1 (!%p262_p2), %v1118_v12  ;;  %v1126_v24 = vpack.c.bf16 (!%p262_p2), %v403_v22, %v400_v21  ;;  %v406_v27 = vld [vmem:[%s1823_s2 + $0xc8] sm:$0xff] (!%p262_p2)  ;;  %v409_v28 = vld [vmem:[%s1823_s2 + $0xe0] sm:$0xff] (!%p262_p2)  ;;  %v431_v29 = vld [vmem:[%s1823_s2 + $0x190] sm:$0xff] (!%p262_p2)  ;;  %v1128_v31 = vpack.c.bf16 (!%p262_p2), %v402_v26, %v399_v25 }
   0xc   : > { %v434_v30 = vld [vmem:[%s1823_s2 + $0x1a8] sm:$0xff] (!%p262_p2)  ;;  %v405_v32 = vld [vmem:[%s1823_s2 + $0xc0] sm:$0xff] (!%p262_p2)  ;;  %v383_v34 = vld [vmem:[%s1823_s2 + $0x10] sm:$0xff] (!%p262_p2)  ;;  %v1130_v35 = vpack.c.bf16 (!%p262_p2), %v409_v28, %v406_v27 }
   0xd   : > { %s1831_s28 = smov (!%p293_p3, %s974_s28), 1  ;;  %v1178_v33 = vpack.c.bf16 %v434_v30, %v431_v29  ;;  %v408_v36 = vld [vmem:[%s1823_s2 + $0xd8] sm:$0xff]  ;;  %v386_v38 = vld [vmem:[%s1823_s2 + $0x28] sm:$0xff]  ;;  %v415_v39 = vld [vmem:[%s1823_s2 + $0x110] sm:$0xff] }
   0xe   : > { %s979_s11 = sshll.u32 %s1831_s28, 3  ;;  %1121 = vmatpush1.bf16.msra.mxu1 %v1120_v16  ;;  %v412_v37 = vld [vmem:[%s1823_s2 + $0xf8] sm:$0xff]  ;;  %v1180_v40 = vpack.c.bf16 %v386_v38, %v383_v34  ;;  %v437_v41 = vld [vmem:[%s1823_s2 + $0x1c0] sm:$0xff]  ;;  %v1132_v46 = vpack.c.bf16 %v408_v36, %v405_v32  ;;  %v411_v47 = vld [vmem:[%s1823_s2 + $0xf0] sm:$0xff] }
   0xf   : > { %s296_s14 = scalar_lea.vmem %s1821_s0, %s979_s11  ;;  %1123 = vmatprep.subr.bf16.mxu1 %v1122_v18  ;;  %1179 = vmatprep.subr.bf16.mxu0 %v1178_v33  ;;  %v440_v42 = vld [vmem:[%s1823_s2 + $0x1d8] sm:$0xff]  ;;  %v389_v44 = vld [vmem:[%s1823_s2 + $0x40] sm:$0xff]  ;;  %v443_v49 = vld [vmem:[%s1823_s2 + $0x1f0] sm:$0xff]  ;;  %v1134_v50 = vpack.c.bf16 %v415_v39, %v412_v37  ;;  %s300_s25 = scalar_lea.vmem %s1829_s8, %s979_s11 }
  0x10   : > { %v301_v17 = vld [vmem:[%s296_s14] sm:$0xff]  ;;  %v1182_v43 = vpack.c.bf16 %v440_v42, %v437_v41  ;;  %v392_v45 = vld [vmem:[%s1823_s2 + $0x58] sm:$0xff]  ;;  %v414_v51 = vld [vmem:[%s1823_s2 + $0x108] sm:$0xff] }
  0x11   : > { %981 = vmatmul.mubr.msk.f32.vlgmr.msra.gmra.mrb[0].mxu0 %vm304_vm0, %v301_v17  ;;  %v1184_v48 = vpack.c.bf16 %v392_v45, %v389_v44  ;;  %v418_v52 = vld [vmem:[%s1823_s2 + $0x128] sm:$0xff]  ;;  %v421_v54 = vld [vmem:[%s1823_s2 + $0x140] sm:$0xff]  ;;  %v395_v56 = vld [vmem:[%s1823_s2 + $0x70] sm:$0xff]  ;;  %v1136_v60 = vpack.c.bf16 %v414_v51, %v411_v47 }
  0x12   : > { %1125 = vmatpush1.bf16.msra.mxu1 %v1124_v23  ;;  %1181 = vmatpush3.bf16.msra.mxu0 %v1180_v40  ;;  %v446_v53 = vld [vmem:[%s1823_s2 + $0x208] sm:$0xff]  ;;  %v449_v58 = vld [vmem:[%s1823_s2 + $0x220] sm:$0xff]  ;;  %v452_v59 = vld [vmem:[%s1823_s2 + $0x238] sm:$0xff]  ;;  %v1138_v0 = vpack.c.bf16 %v421_v54, %v418_v52 }
  0x13   : > { %1127 = vmatprep.subr.bf16.mxu1 %v1126_v24  ;;  %1183 = vmatprep.subr.bf16.mxu0 %v1182_v43  ;;  %v1186_v55 = vpack.c.bf16 %v446_v53, %v443_v49  ;;  %v398_v57 = vld [vmem:[%s1823_s2 + $0x88] sm:$0xff]  ;;  %v417_v61 = vld [vmem:[%s1823_s2 + $0x120] sm:$0xff]  ;;  %v420_v62 = vld [vmem:[%s1823_s2 + $0x138] sm:$0xff]  ;;  %v1190_v2 = vpack.c.bf16 %v452_v59, %v449_v58 }
  0x14   : > { %v1188_v63 = vpack.c.bf16 %v398_v57, %v395_v56  ;;  %v424_v1 = vld [vmem:[%s1823_s2 + $0x158] sm:$0xff]  ;;  %v401_v4 = vld [vmem:[%s1823_s2 + $0xa0] sm:$0xff]  ;;  %v427_v6 = vld [vmem:[%s1823_s2 + $0x170] sm:$0xff]  ;;  %v1140_v9 = vpack.c.bf16 %v420_v62, %v417_v61 }
  0x15   : > { %v404_v5 = vld [vmem:[%s1823_s2 + $0xb8] sm:$0xff]  ;;  %v455_v7 = vld [vmem:[%s1823_s2 + $0x250] sm:$0xff]  ;;  %v458_v8 = vld [vmem:[%s1823_s2 + $0x268] sm:$0xff]  ;;  %v1142_v13 = vpack.c.bf16 %v427_v6, %v424_v1 }
  0x16   : > { %1129 = vmatpush1.bf16.msra.mxu1 %v1128_v31  ;;  %1185 = vmatpush3.bf16.msra.mxu0 %v1184_v48  ;;  %v423_v10 = vld [vmem:[%s1823_s2 + $0x150] sm:$0xff]  ;;  %v426_v11 = vld [vmem:[%s1823_s2 + $0x168] sm:$0xff]  ;;  %v1192_v12 = vpack.c.bf16 %v404_v5, %v401_v4  ;;  %v1194_v15 = vpack.c.bf16 %v458_v8, %v455_v7  ;;  %v433_v18 = vld [vmem:[%s1823_s2 + $0x1a0] sm:$0xff] }
  0x17   : > { %1131 = vmatprep.subr.bf16.mxu1 %v1130_v35  ;;  %1187 = vmatprep.subr.bf16.mxu0 %v1186_v55  ;;  %v430_v14 = vld [vmem:[%s1823_s2 + $0x188] sm:$0xff]  ;;  %v407_v16 = vld [vmem:[%s1823_s2 + $0xd0] sm:$0xff]  ;;  %v461_v19 = vld [vmem:[%s1823_s2 + $0x280] sm:$0xff]  ;;  %v1144_v21 = vpack.c.bf16 %v426_v11, %v423_v10 }
  0x18   : > { %v410_v17 = vld [vmem:[%s1823_s2 + $0xe8] sm:$0xff]  ;;  %v464_v20 = vld [vmem:[%s1823_s2 + $0x298] sm:$0xff]  ;;  %v429_v22 = vld [vmem:[%s1823_s2 + $0x180] sm:$0xff]  ;;  %v1146_v25 = vpack.c.bf16 %v433_v18, %v430_v14 }
  0x19   : > { %v432_v23 = vld [vmem:[%s1823_s2 + $0x198] sm:$0xff]  ;;  %v1196_v24 = vpack.c.bf16 %v410_v17, %v407_v16  ;;  %v1198_v27 = vpack.c.bf16 %v464_v20, %v461_v19  ;;  %v413_v28 = vld [vmem:[%s1823_s2 + $0x100] sm:$0xff]  ;;  %v439_v30 = vld [vmem:[%s1823_s2 + $0x1d0] sm:$0xff] }
  0x1a   : > { %1133 = vmatpush1.bf16.msra.mxu1 %v1132_v46  ;;  %1189 = vmatpush3.bf16.msra.mxu0 %v1188_v63  ;;  %v436_v26 = vld [vmem:[%s1823_s2 + $0x1b8] sm:$0xff]  ;;  %v467_v31 = vld [vmem:[%s1823_s2 + $0x2b0] sm:$0xff]  ;;  %v470_v32 = vld [vmem:[%s1823_s2 + $0x2c8] sm:$0xff]  ;;  %v1148_v33 = vpack.c.bf16 %v432_v23, %v429_v22 }
  0x1b   : > { %1135 = vmatprep.subr.bf16.mxu1 %v1134_v50  ;;  %1191 = vmatprep.subr.bf16.mxu0 %v1190_v2  ;;  %v416_v29 = vld [vmem:[%s1823_s2 + $0x118] sm:$0xff]  ;;  %v435_v34 = vld [vmem:[%s1823_s2 + $0x1b0] sm:$0xff]  ;;  %v1150_v36 = vpack.c.bf16 %v439_v30, %v436_v26  ;;  %v438_v37 = vld [vmem:[%s1823_s2 + $0x1c8] sm:$0xff]  ;;  %v1202_v38 = vpack.c.bf16 %v470_v32, %v467_v31 }
  0x1c   : > { %v1200_v35 = vpack.c.bf16 %v416_v29, %v413_v28  ;;  %v419_v39 = vld [vmem:[%s1823_s2 + $0x130] sm:$0xff]  ;;  %v422_v40 = vld [vmem:[%s1823_s2 + $0x148] sm:$0xff]  ;;  %v445_v42 = vld [vmem:[%s1823_s2 + $0x200] sm:$0xff]  ;;  %v1152_v43 = vpack.c.bf16 %v438_v37, %v435_v34 }
  0x1d   : > { %v442_v41 = vld [vmem:[%s1823_s2 + $0x1e8] sm:$0xff]  ;;  %v1204_v44 = vpack.c.bf16 %v422_v40, %v419_v39  ;;  %v441_v46 = vld [vmem:[%s1823_s2 + $0x1e0] sm:$0xff]  ;;  %v444_v47 = vld [vmem:[%s1823_s2 + $0x1f8] sm:$0xff] }
  0x1e   : > { %1137 = vmatpush1.bf16.msra.mxu1 %v1136_v60  ;;  %1193 = vmatpush3.bf16.msra.mxu0 %v1192_v12  ;;  %v1154_v45 = vpack.c.bf16 %v445_v42, %v442_v41  ;;  %v448_v48 = vld [vmem:[%s1823_s2 + $0x218] sm:$0xff]  ;;  %v451_v49 = vld [vmem:[%s1823_s2 + $0x230] sm:$0xff]  ;;  %v1156_v50 = vpack.c.bf16 %v444_v47, %v441_v46  ;;  %v450_v53 = vld [vmem:[%s1823_s2 + $0x228] sm:$0xff] }
  0x1f   : > { %1139 = vmatprep.subr.bf16.mxu1 %v1138_v0  ;;  %1195 = vmatprep.subr.bf16.mxu0 %v1194_v15  ;;  %v1158_v51 = vpack.c.bf16 %v451_v49, %v448_v48  ;;  %v447_v52 = vld [vmem:[%s1823_s2 + $0x210] sm:$0xff]  ;;  %v454_v54 = vld [vmem:[%s1823_s2 + $0x248] sm:$0xff]  ;;  %v457_v55 = vld [vmem:[%s1823_s2 + $0x260] sm:$0xff] }
  0x20   : > { %v1160_v56 = vpack.c.bf16 %v450_v53, %v447_v52  ;;  %v1162_v57 = vpack.c.bf16 %v457_v55, %v454_v54  ;;  %v453_v58 = vld [vmem:[%s1823_s2 + $0x240] sm:$0xff]  ;;  %v456_v59 = vld [vmem:[%s1823_s2 + $0x258] sm:$0xff]  ;;  %v463_v61 = vld [vmem:[%s1823_s2 + $0x290] sm:$0xff] }
  0x21   : > { %v460_v60 = vld [vmem:[%s1823_s2 + $0x278] sm:$0xff]  ;;  %v1164_v62 = vpack.c.bf16 %v456_v59, %v453_v58  ;;  %v459_v0 = vld [vmem:[%s1823_s2 + $0x270] sm:$0xff]  ;;  %v462_v1 = vld [vmem:[%s1823_s2 + $0x288] sm:$0xff] }
  0x22   : > { %1141 = vmatpush1.bf16.msra.mxu1 %v1140_v9  ;;  %1197 = vmatpush3.bf16.msra.mxu0 %v1196_v24  ;;  %v1166_v63 = vpack.c.bf16 %v463_v61, %v460_v60  ;;  %v466_v2 = vld [vmem:[%s1823_s2 + $0x2a8] sm:$0xff]  ;;  %v469_v4 = vld [vmem:[%s1823_s2 + $0x2c0] sm:$0xff]  ;;  %v1168_v5 = vpack.c.bf16 %v462_v1, %v459_v0  ;;  %v468_v8 = vld [vmem:[%s1823_s2 + $0x2b8] sm:$0xff] }
  0x23   : > { %1143 = vmatprep.subr.bf16.mxu1 %v1142_v13  ;;  %1199 = vmatprep.subr.bf16.mxu0 %v1198_v27  ;;  %v1170_v6 = vpack.c.bf16 %v469_v4, %v466_v2  ;;  %v465_v7 = vld [vmem:[%s1823_s2 + $0x2a0] sm:$0xff]  ;;  %v472_v10 = vld [vmem:[%s1823_s2 + $0x2d8] sm:$0xff]  ;;  %v475_v11 = vld [vmem:[%s1823_s2 + $0x2f0] sm:$0xff] }
  0x24   : > { %v1172_v9 = vpack.c.bf16 %v468_v8, %v465_v7  ;;  %v473_v12 = vld [vmem:[%s1823_s2 + $0x2e0] sm:$0xff]  ;;  %v1174_v13 = vpack.c.bf16 %v475_v11, %v472_v10  ;;  %v476_v14 = vld [vmem:[%s1823_s2 + $0x2f8] sm:$0xff]  ;;  %v471_v15 = vld [vmem:[%s1823_s2 + $0x2d0] sm:$0xff] }
  0x25   : > { %v474_v16 = vld [vmem:[%s1823_s2 + $0x2e8] sm:$0xff]  ;;  %v1206_v17 = vpack.c.bf16 %v476_v14, %v473_v12  ;;  %v425_v19 = vld [vmem:[%s1823_s2 + $0x160] sm:$0xff]  ;;  %v428_v20 = vld [vmem:[%s1823_s2 + $0x178] sm:$0xff] }
  0x26   : > { %1145 = vmatpush1.bf16.msra.mxu1 %v1144_v21  ;;  %1201 = vmatpush3.bf16.msra.mxu0 %v1200_v35  ;;  %v1176_v18 = vpack.c.bf16 %v474_v16, %v471_v15  ;;  %v1208_v21 = vpack.c.bf16 %v428_v20, %v425_v19  ;;  %v654_v22 = vld [vmem:[%s1825_s4 + $0x80] sm:$0xff]  ;;  %v655_v23 = vld [vmem:[%s1825_s4 + $0x88] sm:$0xff]  ;;  %v656_v31 = vld [vmem:[%s1825_s4 + $0x90] sm:$0xff] }
  0x27   : > { %1147 = vmatprep.subr.bf16.mxu1 %v1146_v25  ;;  %1203 = vmatprep.subr.bf16.mxu0 %v1202_v38  ;;  %v1210_v24 = vpack.c.bf16 %v655_v23, %v654_v22  ;;  %v1286_v25 = vmov 0.0|0.0   ;;  %v638_v26 = vld [vmem:[%s1825_s4] sm:$0xff]  ;;  %v639_v27 = vld [vmem:[%s1825_s4 + $0x8] sm:$0xff]  ;;  %v657_v32 = vld [vmem:[%s1825_s4 + $0x98] sm:$0xff] }
  0x28   : > { %v670_v28 = vld [vmem:[%s1825_s4 + $0x100] sm:$0xff]  ;;  %v671_v29 = vld [vmem:[%s1825_s4 + $0x108] sm:$0xff]  ;;  %v1212_v35 = vpack.c.bf16 %v639_v27, %v638_v26  ;;  %v1214_v39 = vpack.c.bf16 %v657_v32, %v656_v31  ;;  %v641_v40 = vld [vmem:[%s1825_s4 + $0x18] sm:$0xff] }
  0x29   : > { %v1243_v37 = vpack.c.bf16 %v671_v29, %v670_v28  ;;  %v672_v41 = vld [vmem:[%s1825_s4 + $0x110] sm:$0xff]  ;;  %v673_v42 = vld [vmem:[%s1825_s4 + $0x118] sm:$0xff]  ;;  %v642_v48 = vld [vmem:[%s1825_s4 + $0x20] sm:$0xff] }
  0x2a   : > { %1149 = vmatpush1.bf16.msra.mxu1 %v1148_v33  ;;  %1205 = vmatpush3.bf16.msra.mxu0 %v1204_v44  ;;  %v659_v44 = vld [vmem:[%s1825_s4 + $0xa8] sm:$0xff]  ;;  %v1246_v46 = vpack.c.bf16 %v673_v42, %v672_v41  ;;  %v644_v54 = vld [vmem:[%s1825_s4 + $0x30] sm:$0xff]  ;;  %v645_v55 = vld [vmem:[%s1825_s4 + $0x38] sm:$0xff] }
  0x2b   : > { %1151 = vmatprep.subr.bf16.mxu1 %v1150_v36  ;;  %1207 = vmatprep.subr.bf16.mxu0 %v1206_v17  ;;  %v640_v36 = vld [vmem:[%s1825_s4 + $0x10] sm:$0xff]  ;;  %v643_v49 = vld [vmem:[%s1825_s4 + $0x28] sm:$0xff]  ;;  %v1224_v58 = vpack.c.bf16 %v645_v55, %v644_v54  ;;  %v646_v60 = vld [vmem:[%s1825_s4 + $0x40] sm:$0xff] }
  0x2c   : > { %v1220_v52 = vpack.c.bf16 %v643_v49, %v642_v48  ;;  %v647_v61 = vld [vmem:[%s1825_s4 + $0x48] sm:$0xff]  ;;  %v648_v2 = vld [vmem:[%s1825_s4 + $0x50] sm:$0xff]  ;;  %v649_v4 = vld [vmem:[%s1825_s4 + $0x58] sm:$0xff] }
  0x2d   : > { %v1228_v0 = vpack.c.bf16 %v647_v61, %v646_v60  ;;  %v1232_v7 = vpack.c.bf16 %v649_v4, %v648_v2  ;;  %v651_v10 = vld [vmem:[%s1825_s4 + $0x68] sm:$0xff]  ;;  %v674_v12 = vld [vmem:[%s1825_s4 + $0x120] sm:$0xff]  ;;  %v668_v15 = vld [vmem:[%s1825_s4 + $0xf0] sm:$0xff] }
  0x2e   : > { %1153 = vmatpush1.bf16.msra.mxu1 %v1152_v43  ;;  %1209 = vmatpush3.bf16.msra.mxu0 %v1208_v21  ;;  %v658_v43 = vld [vmem:[%s1825_s4 + $0xa0] sm:$0xff]  ;;  %v669_v16 = vld [vmem:[%s1825_s4 + $0xf8] sm:$0xff]  ;;  %v676_v21 = vld [vmem:[%s1825_s4 + $0x130] sm:$0xff] }
  0x2f   : > { %1155 = vmatprep.subr.bf16.mxu1 %v1154_v45  ;;  %1211 = vmatprep.subr.bf16.mxu0 %v1210_v24  ;;  %v1216_v45 = vpack.c.bf16 %v641_v40, %v640_v36  ;;  %v1218_v47 = vpack.c.bf16 %v659_v44, %v658_v43  ;;  %v1238_v17 = vpack.c.bf16 %v669_v16, %v668_v15  ;;  %v653_v19 = vld [vmem:[%s1825_s4 + $0x78] sm:$0xff]  ;;  %v479_v24 = vlaneseq  ;;  %v477_v28 = vld [vmem:[%s1824_s3] sm:$0x7]  ;;  %v833_v40 = vld [vmem:[%s1827_s6 + $0x8] sm:$0xff] }
  0x30   : > { %v677_v22 = vld [vmem:[%s1825_s4 + $0x138] sm:$0xff]  ;;  %v834_v48 = vld [vmem:[%s1827_s6 + $0x10] sm:$0xff] }
  0x31   : > { %v1252_v23 = vpack.c.bf16 %v677_v22, %v676_v21  ;;  %v480_v26 = vshrl.u32 %v479_v24, 7  ;;  %v835_v49 = vld [vmem:[%s1827_s6 + $0x18] sm:$0xff] }
  0x32   : > { %1157 = vmatpush1.bf16.msra.mxu1 %v1156_v50  ;;  %v660_v50 = vld [vmem:[%s1825_s4 + $0xb0] sm:$0xff]  ;;  %v839_v54 = vld [vmem:[%s1827_s6 + $0x38] sm:$0xff] }
  0x33   : > { %1159 = vmatprep.subr.bf16.mxu1 %v1158_v51  ;;  %v661_v51 = vld [vmem:[%s1825_s4 + $0xb8] sm:$0xff]  ;;  %v481_v27 = vsub.s32 0, %v480_v26  ;;  %v485_v29 = vsub.s32 1, %v480_v26 }
  0x34   : > { %v1222_v53 = vpack.c.bf16 %v661_v51, %v660_v50  ;;  %v1258_v50 = vpack.c.bf16 %v835_v49, %v834_v48  ;;  %v836_v51 = vld [vmem:[%s1827_s6 + $0x20] sm:$0xff] }
  0x35   : > { %v482_v31 = vrot.slane %v477_v28, %v481_v27  ;;  %v486_v32 = vrot.slane %v477_v28, %v485_v29 }
  0x36   : > { %1161 = vmatpush1.bf16.msra.mxu1 %v1160_v56  ;;  %v662_v56 = vld [vmem:[%s1825_s4 + $0xc0] sm:$0xff] }
  0x37   : > { %1163 = vmatprep.subr.bf16.mxu1 %v1162_v57  ;;  %v663_v57 = vld [vmem:[%s1825_s4 + $0xc8] sm:$0xff] }
  0x38   : > { %v1226_v59 = vpack.c.bf16 %v663_v57, %v662_v56 }
  0x3a   : > { %1165 = vmatpush1.bf16.msra.mxu1 %v1164_v62  ;;  %v664_v62 = vld [vmem:[%s1825_s4 + $0xd0] sm:$0xff] }
  0x3b   : > { %1167 = vmatprep.subr.bf16.mxu1 %v1166_v63  ;;  %v665_v63 = vld [vmem:[%s1825_s4 + $0xd8] sm:$0xff] }
  0x3c   : > { %v1230_v1 = vpack.c.bf16 %v665_v63, %v664_v62 }
  0x3e   : > { %1169 = vmatpush1.bf16.msra.mxu1 %v1168_v5  ;;  %v666_v5 = vld [vmem:[%s1825_s4 + $0xe0] sm:$0xff] }
  0x3f   : > { %1171 = vmatprep.subr.bf16.mxu1 %v1170_v6  ;;  %v667_v6 = vld [vmem:[%s1825_s4 + $0xe8] sm:$0xff] }
  0x40   : > { %v1234_v8 = vpack.c.bf16 %v667_v6, %v666_v5 }
  0x42   : > { %1173 = vmatpush1.bf16.msra.mxu1 %v1172_v9  ;;  %v650_v9 = vld [vmem:[%s1825_s4 + $0x60] sm:$0xff] }
  0x43   : > { %1175 = vmatprep.subr.bf16.mxu1 %v1174_v13  ;;  %v1236_v11 = vpack.c.bf16 %v651_v10, %v650_v9  ;;  %v675_v13 = vld [vmem:[%s1825_s4 + $0x128] sm:$0xff] }
  0x44   : > { %v1249_v14 = vpack.c.bf16 %v675_v13, %v674_v12 }
  0x46   : > { %1177 = vmatpush1.bf16.msra.mxu1 %v1176_v18  ;;  %v652_v18 = vld [vmem:[%s1825_s4 + $0x70] sm:$0xff] }
  0x47   : > { %1242 = vmatprep.subr.bf16.mxu1 %v1286_v25  ;;  %v1240_v20 = vpack.c.bf16 %v653_v19, %v652_v18 }
  0xe4   : > { %v374_v30 = vpop.f32.mrb[0].mxu0 }
  0xe5   : > { %v376_v33 = vpop.f32.mrb[1].mxu0  ;;  %v379_v38 = vmax.f32 %v374_v30, 0.0  ;;  %v489_v30 = vsub.s32 2, %v480_v26 }
  0xe6   : > { %v380_v34 = vmax.f32 %v376_v33, 0.0 }
  0xe8   : > { %558 = vmatprep.mubr.f32.mxu1 %v380_v34  ;;  %629 = vmatprep.mubr.f32.mxu0 %v380_v34 }
  0xe9   : > { %559 = vmatmul.mubr.f32.vlgmr.msra.gmra.mrb[0].mxu1 %v379_v38  ;;  %630 = vmatmul.mubr.f32.vlgmr.msra.gmra.mrb[2].mxu0 %v379_v38 }
  0xea   : > { %1213 = vmatpush3.bf16.msra.mxu0 %v1212_v35  ;;  %1244 = vmatpush3.bf16.msra.mxu1 %v1243_v37  ;;  %v490_v35 = vrot.slane %v477_v28, %v489_v30 }
  0xeb   : > { %1215 = vmatprep.subr.bf16.mxu0 %v1214_v39  ;;  %1245 = vmatprep.subr.bf16.mxu1 %v1286_v25  ;;  %v832_v39 = vld [vmem:[%s1827_s6] sm:$0xff] }
  0xec   : > { %1092 = vmatprep.mubr.msk.f32.mxu1 %vm1287_vm1, %v1285_v3 }
  0xee   : > { %1217 = vmatpush3.bf16.msra.mxu0 %v1216_v45  ;;  %1247 = vmatpush3.bf16.msra.mxu1 %v1246_v46  ;;  %v1255_v45 = vpack.c.bf16 %v833_v40, %v832_v39 }
  0xef   : > { %1219 = vmatprep.subr.bf16.mxu0 %v1218_v47  ;;  %1248 = vmatprep.subr.bf16.mxu1 %v1286_v25 }
  0xf2   : > { %1221 = vmatpush3.bf16.msra.mxu0 %v1220_v52  ;;  %1250 = vmatpush3.bf16.msra.mxu1 %v1249_v14 }
  0xf3   : > { %1223 = vmatprep.subr.bf16.mxu0 %v1222_v53  ;;  %1251 = vmatprep.subr.bf16.mxu1 %v1286_v25  ;;  %v838_v53 = vld [vmem:[%s1827_s6 + $0x30] sm:$0xff] }
  0xf4   : > { %v1264_v55 = vpack.c.bf16 %v839_v54, %v838_v53 }
  0xf6   : > { %1225 = vmatpush3.bf16.msra.mxu0 %v1224_v58  ;;  %1253 = vmatpush3.bf16.msra.mxu1 %v1252_v23  ;;  %v982_v58 = vld [vmem:[%s1826_s5] ss:$0 sm:$0xff] }
  0xf7   : > { %1227 = vmatprep.subr.bf16.mxu0 %v1226_v59 }
  0xfa   : > { %1229 = vmatpush3.bf16.msra.mxu0 %v1228_v0 }
  0xfb   : > { %1231 = vmatprep.subr.bf16.mxu0 %v1230_v1  ;;  %v984_v1 = vld [vmem:[%s1828_s7] ss:$0 sm:$0xff] }
  0xfe   : > { %1233 = vmatpush3.bf16.msra.mxu0 %v1232_v7 }
  0xff   : > { %1235 = vmatprep.subr.bf16.mxu0 %v1234_v8 }
 0x102   : > { %1237 = vmatpush3.bf16.msra.mxu0 %v1236_v11 }
 0x103   : > { %1239 = vmatprep.subr.bf16.mxu0 %v1238_v17 }
 0x106   : > { %1241 = vmatpush3.bf16.msra.mxu0 %v1240_v20 }
 0x107   : > { %1254 = vmatprep.subr.bf16.mxu0 %v1286_v25 }
 0x1bc   : > { %v560_v33 = vpop.f32.mrb[0].mxu1  ;;  %v1020_v34 = vpop.f32.mrb[2].mxu0 }
 0x1bd   : > { %v561_v36 = vadd.f32 %v560_v33, %v482_v31  ;;  %v562_v37 = vpop.f32.mrb[1].mxu1  ;;  %v1021_v38 = vpop.f32.mrb[3].mxu0 }
 0x1be   : > { %v563_v41 = vadd.f32 %v562_v37, %v486_v32  ;;  %v1022_v42 = vadd.f32 %v1021_v38, %v1020_v34 }
 0x1bf   : > { %v635_v46 = vmax.f32 %v561_v36, 0.0 }
 0x1c0   : > { %v636_v43 = vmax.f32 %v563_v41, 0.0  ;;  %v632_v44 = vadd.f32 %v1022_v42, %v490_v35 }
 0x1c2   : > { %v637_v47 = vmax.f32 %v632_v44, 0.0  ;;  %753 = vmatprep.mubr.f32.mxu0 %v636_v43 }
 0x1c3   : > { %754 = vmatmul.mubr.f32.vlgmr.msra.gmra.mrb[4].mxu0 %v635_v46 }
 0x1c4   : > { %1093 = vmatmul.mubr.msk.f32.vlgmr.msra.gmra.mrb[2].mxu1 %vm685_vm2, %v637_v47  ;;  %1256 = vmatpush3.bf16.msra.mxu0 %v1255_v45 }
 0x1c5   : > { %1257 = vmatprep.subr.bf16.mxu0 %v1286_v25  ;;  %1111 = vmatprep.mubr.msk.f32.mxu0 %vm1287_vm1, %v1285_v3  ;;  %v837_v3 = vld [vmem:[%s1827_s6 + $0x28] sm:$0xff] }
 0x1c6   : > { %v1261_v52 = vpack.c.bf16 %v837_v3, %v836_v51 }
 0x1c8   : > { %1259 = vmatpush3.bf16.msra.mxu0 %v1258_v50 }
 0x1c9   : > { %1260 = vmatprep.subr.bf16.mxu0 %v1286_v25 }
 0x1cc   : > { %1262 = vmatpush3.bf16.msra.mxu0 %v1261_v52 }
 0x1cd   : > { %1263 = vmatprep.subr.bf16.mxu0 %v1286_v25 }
 0x1d0   : > { %1265 = vmatpush3.bf16.msra.mxu0 %v1264_v55 }
 0x296   : > { %v1055_v56 = vpop.f32.mrb[4].mxu0 }
 0x297   : > { %v1056_v57 = vpop.f32.mrb[5].mxu0  ;;  %v825_v59 = vpop.f32.mrb[2].mxu1 }
 0x298   : > { %v1057_v60 = vadd.f32 %v1056_v57, %v1055_v56  ;;  %v1094_v25 = vpop.f32.mrb[3].mxu1 }
 0x29a   : > { %v756_v61 = vadd.f32 %v1057_v60, %v982_v58 }
 0x29c   : > { %v826_v62 = vadd.f32 %v825_v59, %v756_v61 }
 0x29e   : > { %vm829_vm3 = vcmp.ge.f32.partialorder %v826_v62, 0.0  ;;  %v830_v63 = vmul.f32 0.01, %v826_v62 }
 0x2a0   : > { %v831_v0 = vsel %vm829_vm3, %v826_v62, %v830_v63 }
 0x2a1   : > { %1112 = vmatmul.mubr.msk.f32.vlgmr.msra.gmra.mrb[6].mxu0 %vm685_vm2, %v831_v0 }
 0x374   : > { %v916_v2 = vpop.f32.mrb[6].mxu0 }
 0x375   : > { %v917_v4 = vadd.f32 %v984_v1, %v916_v2  ;;  %v1113_v5 = vpop.f32.mrb[7].mxu0 }
 0x377   : > { %920 = vst.msk [vmem:[%s300_s25] sm:$0xff] %vm304_vm0, %v917_v4 }
 0x378 PF: > { %s18_s27 = sadd.s32 1, %s1283_s27  }
 0x379   : > { %p15_p4 = scmp.ge.s32.totalorder %s18_s27, 4  }
 0x37b   :  { %17 = sbr.rel (!%p15_p4) target bundleno = 1 (0x1), region = 82 }

</bundles_post_ra>
